<compile_context>
chip_gen: v5e
topology: v5e:2x2
jax: 0.10.0
libtpu: 0.0.40
codegen_flags: <defaults>
</compile_context>

<pallas_src>
import jax
import jax.numpy as jnp
from jax.experimental import pallas as pl
from jax.experimental.pallas import tpu as pltpu

N_MFCC = 13
NUM_CLASSES = 2
IN_DIM = 2 * N_MFCC      # 26
H1 = 64
H2 = 32
MAX_TILE_B = 4096        # per-step VMEM footprint (incl. lane-padded intermediates) ~17 MiB


def _round_up(n, m):
    return ((n + m - 1) // m) * m


def _num_tensorcores_per_chip():
    # v7x has 2 TensorCores per chip; v5e/v6e have 1.  Only used to keep >=2 grid steps
    # so dimension_semantics=("parallel",) can shard work across both cores.
    try:
        kind = jax.devices()[0].device_kind.lower()
        if "v7" in kind:
            return 2
    except Exception:
        pass
    return 1


def mlp_kernel(x_ref, w1_ref, b1_ref, w2_ref, b2_ref, w3_ref, b3_ref, o_ref):
    # Three fused MXU matmuls + VPU ReLUs on one batch tile.
    # x arrives f32 (no wrapper cast pass) and is cast to bf16 here for the MXU;
    # weights are bf16 (VMEM-resident); accumulation and bias/ReLU stay f32.
    x = x_ref[...].astype(jnp.bfloat16)
    h1 = jnp.dot(x, w1_ref[...], preferred_element_type=jnp.float32) + b1_ref[...]
    h1 = jnp.maximum(h1, 0.0)
    h2 = jnp.dot(h1.astype(jnp.bfloat16), w2_ref[...],
                 preferred_element_type=jnp.float32) + b2_ref[...]
    h2 = jnp.maximum(h2, 0.0)
    out = jnp.dot(h2.astype(jnp.bfloat16), w3_ref[...],
                  preferred_element_type=jnp.float32) + b3_ref[...]
    o_ref[...] = out.astype(o_ref.dtype)


def prepare_params(params):
    """One-time conversion: weights -> bf16, biases stay f32 (done outside the hot path)."""
    w1, b1, w2, b2, w3, b3 = params
    return (w1.astype(jnp.bfloat16), b1,
            w2.astype(jnp.bfloat16), b2,
            w3.astype(jnp.bfloat16), b3)


def mlp_forward(x, prepared_params, *, tile_b=MAX_TILE_B):
    w1b, b1, w2b, b2, w3b, b3 = prepared_params
    B = x.shape[0]

    # Tile the batch: biggest tile that fits, multiple of 8 rows.
    tile_b = min(tile_b, _round_up(B, 8))
    # On 2-TC chips (v7x), keep >=2 grid steps so "parallel" can use both cores.
    if _num_tensorcores_per_chip() >= 2 and B > 8:
        half = max(8, _round_up((B + 1) // 2, 8))
        tile_b = min(tile_b, half)
    grid = (pl.cdiv(B, tile_b),)

    resident = lambda i: (0, 0)      # same block every step -> weights/biases stay in VMEM
    batch_tile = lambda i: (i, 0)

    flops = int(2 * B * (IN_DIM * H1 + H1 * H2 + H2 * NUM_CLASSES))
    bytes_accessed = int(
        x.size * 4 + B * NUM_CLASSES * 4            # streamed input f32 + unpadded f32 logits
        + (w1b.size + w2b.size + w3b.size) * 2      # bf16 weights (resident)
        + (b1.size + b2.size + b3.size) * 4)        # f32 biases (resident)

    out = pl.pallas_call(
        mlp_kernel,
        out_shape=jax.ShapeDtypeStruct((B, NUM_CLASSES), jnp.float32),
        grid=grid,
        in_specs=[
            pl.BlockSpec((tile_b, IN_DIM), batch_tile),      # x: batch-tiled, f32
            pl.BlockSpec((IN_DIM, H1), resident),            # w1 (bf16)
            pl.BlockSpec((1, H1), resident),                 # b1 (f32)
            pl.BlockSpec((H1, H2), resident),                # w2 (bf16)
            pl.BlockSpec((1, H2), resident),                 # b2 (f32)
            pl.BlockSpec((H2, NUM_CLASSES), resident),       # w3 (bf16, unpadded)
            pl.BlockSpec((1, NUM_CLASSES), resident),        # b3 (f32, unpadded)
        ],
        out_specs=pl.BlockSpec((tile_b, NUM_CLASSES), batch_tile),
        compiler_params=pltpu.CompilerParams(
            dimension_semantics=("parallel",),
            vmem_limit_bytes=48 * 1024 * 1024),
        cost_estimate=pl.CostEstimate(
            flops=flops, transcendentals=0, bytes_accessed=bytes_accessed),
    )(x, w1b, b1, w2b, b2, w3b, b3)

    return out


def init_params(key):
    # Deterministic synthetic init (PyTorch-Linear-like uniform bounds).
    # Weights are stored transposed vs PyTorch, i.e. W_k has shape (in, out).
    ks = jax.random.split(key, 6)

    def lin(kw, kb, fan_in, fan_out):
        bound = 1.0 / jnp.sqrt(float(fan_in))
        w = jax.random.uniform(kw, (fan_in, fan_out), jnp.float32, -bound, bound)
        b = jax.random.uniform(kb, (1, fan_out), jnp.float32, -bound, bound)
        return w, b

    w1, b1 = lin(ks[0], ks[1], IN_DIM, H1)
    w2, b2 = lin(ks[2], ks[3], H1, H2)
    w3, b3 = lin(ks[4], ks[5], H2, NUM_CLASSES)
    return (w1, b1, w2, b2, w3, b3)


def mlp_reference(x, params):
    # Mirrors the kernel's bf16 MXU inputs (f32 accumulation, f32 bias/ReLU).
    w1, b1, w2, b2, w3, b3 = params
    bf = lambda a: a.astype(jnp.bfloat16)
    f32 = jnp.float32
    h1 = jnp.maximum(jnp.dot(bf(x), bf(w1), preferred_element_type=f32) + b1, 0.0)
    h2 = jnp.maximum(jnp.dot(bf(h1), bf(w2), preferred_element_type=f32) + b2, 0.0)
    return jnp.dot(bf(h2), bf(w3), preferred_element_type=f32) + b3


if __name__ == "__main__":
    key = jax.random.PRNGKey(0)
    k_x, k_x2, k_p = jax.random.split(key, 3)
    params = init_params(k_p)
    pparams = prepare_params(params)   # one-time bf16 weight cast

    # Small batch (single grid step).
    B = 8
    x = jax.random.normal(k_x, (B, IN_DIM), dtype=jnp.float32)
    out = jax.block_until_ready(mlp_forward(x, pparams))
    ref = jax.block_until_ready(mlp_reference(x, params))
    assert out.shape == (B, NUM_CLASSES)
    assert jnp.allclose(out, ref, atol=2e-3, rtol=2e-3)

    # Multi-tile batch with a ragged tail (exercises the grid + masked writeback).
    B2 = 300
    x2 = jax.random.normal(k_x2, (B2, IN_DIM), dtype=jnp.float32)
    out2 = jax.block_until_ready(mlp_forward(x2, pparams, tile_b=128))
    ref2 = jax.block_until_ready(mlp_reference(x2, params))
    assert out2.shape == (B2, NUM_CLASSES)
    assert jnp.allclose(out2, ref2, atol=2e-3, rtol=2e-3)

    print("KERNEL_OK")
</pallas_src>

<mosaic_0001>
module attributes {stable_mosaic.version = 11 : i64} {
  func.func @mlp_kernel(%arg0: i32, %arg1: memref<8x26xf32, #tpu.memory_space<vmem>>, %arg2: memref<26x64xbf16, #tpu.memory_space<vmem>>, %arg3: memref<1x64xf32, #tpu.memory_space<vmem>>, %arg4: memref<64x32xbf16, #tpu.memory_space<vmem>>, %arg5: memref<1x32xf32, #tpu.memory_space<vmem>>, %arg6: memref<32x2xbf16, #tpu.memory_space<vmem>>, %arg7: memref<1x2xf32, #tpu.memory_space<vmem>>, %arg8: memref<8x2xf32, #tpu.memory_space<vmem>>) attributes {dimension_semantics = [#tpu.dimension_semantics<parallel>], iteration_bounds = array<i64: 1>, scalar_prefetch = 0 : i64, scratch_operands = 0 : i64, tpu.core_type = #tpu.core_type<tc>, window_params = [{transform_indices = @transform_0, window_bounds = array<i64: 8, 26>}, {pipeline_mode = #tpu.pipeline_mode<synchronous>, transform_indices = @transform_1, window_bounds = array<i64: 26, 64>}, {pipeline_mode = #tpu.pipeline_mode<synchronous>, transform_indices = @transform_2, window_bounds = array<i64: 1, 64>}, {pipeline_mode = #tpu.pipeline_mode<synchronous>, transform_indices = @transform_3, window_bounds = array<i64: 64, 32>}, {pipeline_mode = #tpu.pipeline_mode<synchronous>, transform_indices = @transform_4, window_bounds = array<i64: 1, 32>}, {pipeline_mode = #tpu.pipeline_mode<synchronous>, transform_indices = @transform_5, window_bounds = array<i64: 32, 2>}, {pipeline_mode = #tpu.pipeline_mode<synchronous>, transform_indices = @transform_6, window_bounds = array<i64: 1, 2>}, {transform_indices = @transform_7, window_bounds = array<i64: 8, 2>}]} {
    %c0 = arith.constant 0 : index
    %c0_0 = arith.constant 0 : index
    %0 = vector.load %arg1[%c0, %c0_0] : memref<8x26xf32, #tpu.memory_space<vmem>>, vector<8x26xf32>
    %1 = arith.truncf %0 : vector<8x26xf32> to vector<8x26xbf16>
    %c0_1 = arith.constant 0 : index
    %c0_2 = arith.constant 0 : index
    %2 = vector.load %arg2[%c0_1, %c0_2] : memref<26x64xbf16, #tpu.memory_space<vmem>>, vector<26x64xbf16>
    %cst = arith.constant dense<0.000000e+00> : vector<8x64xf32>
    %3 = tpu.matmul %1, %2, %cst {dimension_numbers = #tpu.dot_dimension_numbers<[1], [0], [0], [1], [0, 0, 1, 1], [], []>} : vector<8x26xbf16>, vector<26x64xbf16>, vector<8x64xf32> -> vector<8x64xf32>
    %c0_3 = arith.constant 0 : index
    %c0_4 = arith.constant 0 : index
    %4 = vector.load %arg3[%c0_3, %c0_4] : memref<1x64xf32, #tpu.memory_space<vmem>>, vector<1x64xf32>
    %5 = vector.broadcast %4 : vector<1x64xf32> to vector<8x64xf32>
    %6 = arith.addf %3, %5 : vector<8x64xf32>
    %cst_5 = arith.constant 0.000000e+00 : f32
    %7 = vector.broadcast %cst_5 : f32 to vector<8x64xf32>
    %8 = arith.maximumf %6, %7 : vector<8x64xf32>
    %9 = arith.truncf %8 : vector<8x64xf32> to vector<8x64xbf16>
    %c0_6 = arith.constant 0 : index
    %c0_7 = arith.constant 0 : index
    %10 = vector.load %arg4[%c0_6, %c0_7] : memref<64x32xbf16, #tpu.memory_space<vmem>>, vector<64x32xbf16>
    %cst_8 = arith.constant dense<0.000000e+00> : vector<8x32xf32>
    %11 = tpu.matmul %9, %10, %cst_8 {dimension_numbers = #tpu.dot_dimension_numbers<[1], [0], [0], [1], [0, 0, 1, 1], [], []>} : vector<8x64xbf16>, vector<64x32xbf16>, vector<8x32xf32> -> vector<8x32xf32>
    %c0_9 = arith.constant 0 : index
    %c0_10 = arith.constant 0 : index
    %12 = vector.load %arg5[%c0_9, %c0_10] : memref<1x32xf32, #tpu.memory_space<vmem>>, vector<1x32xf32>
    %13 = vector.broadcast %12 : vector<1x32xf32> to vector<8x32xf32>
    %14 = arith.addf %11, %13 : vector<8x32xf32>
    %cst_11 = arith.constant 0.000000e+00 : f32
    %15 = vector.broadcast %cst_11 : f32 to vector<8x32xf32>
    %16 = arith.maximumf %14, %15 : vector<8x32xf32>
    %17 = arith.truncf %16 : vector<8x32xf32> to vector<8x32xbf16>
    %c0_12 = arith.constant 0 : index
    %c0_13 = arith.constant 0 : index
    %18 = vector.load %arg6[%c0_12, %c0_13] : memref<32x2xbf16, #tpu.memory_space<vmem>>, vector<32x2xbf16>
    %cst_14 = arith.constant dense<0.000000e+00> : vector<8x2xf32>
    %19 = tpu.matmul %17, %18, %cst_14 {dimension_numbers = #tpu.dot_dimension_numbers<[1], [0], [0], [1], [0, 0, 1, 1], [], []>} : vector<8x32xbf16>, vector<32x2xbf16>, vector<8x2xf32> -> vector<8x2xf32>
    %c0_15 = arith.constant 0 : index
    %c0_16 = arith.constant 0 : index
    %20 = vector.load %arg7[%c0_15, %c0_16] : memref<1x2xf32, #tpu.memory_space<vmem>>, vector<1x2xf32>
    %21 = vector.broadcast %20 : vector<1x2xf32> to vector<8x2xf32>
    %22 = arith.addf %19, %21 : vector<8x2xf32>
    %c0_17 = arith.constant 0 : index
    %c0_18 = arith.constant 0 : index
    %23 = vector.load %arg8[%c0_17, %c0_18] : memref<8x2xf32, #tpu.memory_space<vmem>>, vector<8x2xf32>
    tpu.vector_store %arg8[%c0_17, %c0_18], %22 {strides = array<i32>} : memref<8x2xf32, #tpu.memory_space<vmem>>, vector<8x2xf32>,
    return
  }
  func.func @transform_0(%arg0: i32) -> (i32, i32) {
    %c0_i32 = arith.constant 0 : i32
    %c0_i32_0 = arith.constant 0 : i32
    return %arg0, %c0_i32 : i32, i32
  }
  func.func @transform_1(%arg0: i32) -> (i32, i32) {
    %c0_i32 = arith.constant 0 : i32
    %c0_i32_0 = arith.constant 0 : i32
    %c0_i32_1 = arith.constant 0 : i32
    return %c0_i32, %c0_i32_0 : i32, i32
  }
  func.func @transform_2(%arg0: i32) -> (i32, i32) {
    %c0_i32 = arith.constant 0 : i32
    %c0_i32_0 = arith.constant 0 : i32
    %c0_i32_1 = arith.constant 0 : i32
    return %c0_i32, %c0_i32_0 : i32, i32
  }
  func.func @transform_3(%arg0: i32) -> (i32, i32) {
    %c0_i32 = arith.constant 0 : i32
    %c0_i32_0 = arith.constant 0 : i32
    %c0_i32_1 = arith.constant 0 : i32
    return %c0_i32, %c0_i32_0 : i32, i32
  }
  func.func @transform_4(%arg0: i32) -> (i32, i32) {
    %c0_i32 = arith.constant 0 : i32
    %c0_i32_0 = arith.constant 0 : i32
    %c0_i32_1 = arith.constant 0 : i32
    return %c0_i32, %c0_i32_0 : i32, i32
  }
  func.func @transform_5(%arg0: i32) -> (i32, i32) {
    %c0_i32 = arith.constant 0 : i32
    %c0_i32_0 = arith.constant 0 : i32
    %c0_i32_1 = arith.constant 0 : i32
    return %c0_i32, %c0_i32_0 : i32, i32
  }
  func.func @transform_6(%arg0: i32) -> (i32, i32) {
    %c0_i32 = arith.constant 0 : i32
    %c0_i32_0 = arith.constant 0 : i32
    %c0_i32_1 = arith.constant 0 : i32
    return %c0_i32, %c0_i32_0 : i32, i32
  }
  func.func @transform_7(%arg0: i32) -> (i32, i32) {
    %c0_i32 = arith.constant 0 : i32
    %c0_i32_0 = arith.constant 0 : i32
    return %arg0, %c0_i32 : i32, i32
  }
}

</mosaic_0001>

<bundles_post_ra>
// kernel: tpu_custom_call.1
= control target key start
LH: loop header
LB: loop body
LE: loop exit
PB: predicated region body
PF: predicated region fallthrough
CT: control target
= control target key end

     0   :  { %vm52_vm0 = vcmask 1044480   ;;  %vm48_vm1 = vcmask 211968   ;;  %vm107_vm2 = vcmask 523264   ;;  %vm146_vm3 = vcmask 261120   ;;  %s297_s1 = inlined_call_operand.vmem [shape: bf16[26,64], index: 1, kind: input, shape index: {}]   ;;  %s298_s3 = inlined_call_operand.vmem [shape: bf16[64,32], index: 3, kind: input, shape index: {}]   ;;  %s299_s0 = inlined_call_operand.vmem [shape: f32[8,26], index: 0, kind: input, shape index: {}]   ;;  %s300_s2 = inlined_call_operand.vmem [shape: f32[1,64], index: 2, kind: input, shape index: {}]   ;;  %s301_s4 = inlined_call_operand.vmem [shape: f32[1,32], index: 4, kind: input, shape index: {}]   ;;  %s302_s6 = inlined_call_operand.vmem [shape: f32[1,2], index: 6, kind: input, shape index: {}]   ;;  %s303_s5 = inlined_call_operand.vmem [shape: bf16[32,2], index: 5, kind: input, shape index: {}]   ;;  %s304_s7 = inlined_call_operand.vmem [shape: f32[8,2], index: 7, kind: output, shape index: {}]  }
   0x1   :  { %v175_v0 = vld [vmem:[%s297_s1 + $0x8] sm:$0xf]  ;;  %v205_v1 = vld [vmem:[%s297_s1 + $0x8] sm:$0x10]  ;;  %v209_v3 = vld [vmem:[%s298_s3 + $0x18] sm:$0xff]  ;;  %vm163_vm4 = vcmask 15360  }
   0x2   :  { %v176_v2 = vor.u32 %v205_v1, %v175_v0  ;;  %115 = vmatpush.bf16.msra.mxu1 %v209_v3  ;;  %v208_v5 = vld [vmem:[%s298_s3 + $0x10] sm:$0xff]  ;;  %v204_v6 = vld [vmem:[%s297_s1] sm:$0xff]  ;;  %v207_v9 = vld [vmem:[%s298_s3 + $0x8] sm:$0xff] }
   0x3   :  { %v27_v7 = vld [vmem:[%s299_s0] sm:$0xff]  ;;  %v211_v17 = vld [vmem:[%s303_s5 + $0x8] sm:$0xff] }
   0x4   :  { %v54_v4 = vsel %vm52_vm0, %v176_v2, 0  ;;  %v28_v8 = vpack.c.bf16 %v27_v7, %v27_v7  ;;  %v206_v10 = vld [vmem:[%s298_s3] sm:$0xff]  ;;  %156 = vmatpush.bf16.msra.mxu2 %v211_v17 }
   0x5   :  { %62 = vmatpush.bf16.msra.mxu0 %v54_v4  ;;  %v212_v11 = vld [vmem:[%s300_s2] ss:$0 sm:$0xff] }
   0x6   :  { %116 = vmatpush.bf16.msra.mxu1 %v208_v5  ;;  %v210_v18 = vld [vmem:[%s303_s5] sm:$0xff] }
   0x7   :  { %v213_v19 = vld [vmem:[%s301_s4] ss:$0 sm:$0xff] }
   0x8   :  { %157 = vmatpush.bf16.msra.mxu2 %v210_v18  ;;  %v214_v25 = vld [vmem:[%s302_s6] ss:$0 sm:$0xff] }
   0x9   :  { %63 = vmatpush.bf16.msra.mxu0 %v204_v6 }
   0xa   :  { %117 = vmatpush.bf16.msra.mxu1 %v207_v9 }
   0xc   :  { %177 = vmatmul.msk.bf16.vlgmr.msra.gmra.mxu0 %vm48_vm1, %v28_v8 }
   0xe   :  { %118 = vmatpush.bf16.msra.mxu1 %v206_v10 }
  0x89   :  { %v65_v12 = vpop.f32.mrf.mxu0 }
  0x8a   :  { %v66_v13 = vadd.f32 %v212_v11, %v65_v12 }
  0x8c   :  { %v69_v14 = vmax.f32 %v66_v13, 0.0 }
  0x8e   :  { %v70_v15 = vpack.c.bf16 %v69_v14, %v69_v14 }
  0x90   :  { %194 = vmatmul.msk.bf16.vlgmr.msra.gmra.mxu1 %vm107_vm2, %v70_v15 }
  0x91   :  { %v67_v16 = vpop.f32.mrf.mxu0 }
 0x10d   :  { %v120_v20 = vpop.f32.mrf.mxu1 }
 0x10e   :  { %v121_v21 = vadd.f32 %v213_v19, %v120_v20 }
 0x110   :  { %v124_v22 = vmax.f32 %v121_v21, 0.0 }
 0x112   :  { %v125_v23 = vpack.c.bf16 %v124_v22, %v124_v22 }
 0x114   :  { %203 = vmatmul.msk.bf16.vlgmr.msra.gmra.mxu2 %vm146_vm3, %v125_v23 }
 0x115   :  { %v122_v24 = vpop.f32.mrf.mxu1 }
 0x197   :  { %v159_v26 = vpop.f32.mrf.mxu2 }
 0x198   :  { %v160_v27 = vadd.f32 %v214_v25, %v159_v26 }
 0x19a   :  { %164 = vst.msk [vmem:[%s304_s7] sm:$0xff] %vm163_vm4, %v160_v27 }
 0x19f   :  { %v161_v28 = vpop.f32.mrf.mxu2 }

</bundles_post_ra>
